<compile_context>
chip_gen: v5e
topology: v5e:2x2
jax: 0.10.0
libtpu: 0.0.40
codegen_flags: <defaults>
</compile_context>

<pallas_src>
import jax
import jax.numpy as jnp
from jax.experimental import pallas as pl
from jax.experimental.pallas import tpu as pltpu


def _round_up(a, b):
    return (a + b - 1) // b * b


def _nnrg_kernel_reduce(x_ref, w1_ref, b1_ref, w2row_ref, b2_ref, o_ref):
    """o_dim == 1 path: second 'matmul' done on VPU/XLU (mul + lane reduce)."""
    # Hidden layer on the MXU, f32 accumulation.
    h = jnp.dot(x_ref[...], w1_ref[...], preferred_element_type=jnp.float32)
    h = jnp.maximum(h + b1_ref[...], 0.0)          # f32 bias + ReLU (VPU)
    # (TILE_B, h_dim) * (1, h_dim) -> lane-reduce -> (TILE_B, 1)
    y = jnp.sum(h * w2row_ref[...], axis=-1, keepdims=True)
    # Write a lane-dense slab (b2 is pre-broadcast across the padded lanes).
    o_ref[...] = (jnp.broadcast_to(y, o_ref.shape) + b2_ref[...]).astype(o_ref.dtype)


def _nnrg_kernel_matmul(x_ref, w1_ref, b1_ref, w2_ref, b2_ref, o_ref):
    """General o_dim path: second layer on the MXU (w2/b2 zero-padded to lane width)."""
    h = jnp.dot(x_ref[...], w1_ref[...], preferred_element_type=jnp.float32)
    h = jnp.maximum(h + b1_ref[...], 0.0)
    y = jnp.dot(h, w2_ref[...], preferred_element_type=jnp.float32) + b2_ref[...]
    o_ref[...] = y.astype(o_ref.dtype)


def nnrg_forward(x, w1, b1, w2, b2, *, use_bf16=False, tile_b=128):
    """Fused NNRG forward: relu(x @ w1 + b1) @ w2 + b2.

    x:  [B, i_dim]            w1: [i_dim, h_dim], b1: [h_dim]
    w2: [h_dim, o_dim]        b2: [o_dim]
    returns [B, o_dim] float32
    """
    B, i_dim = x.shape
    h_dim = w1.shape[1]
    o_dim = w2.shape[1]

    # --- batch tiling (grid over B, padded to a multiple of the tile) -------
    TILE_B = tile_b
    if B <= TILE_B:
        TILE_B = max(_round_up(B, 8), 8)
        B_pad = TILE_B
    else:
        B_pad = _round_up(B, TILE_B)
    if B_pad != B:
        x = jnp.pad(x, ((0, B_pad - B), (0, 0)))
    num_blocks = B_pad // TILE_B

    # --- lane-dense output slab ---------------------------------------------
    OUT_PAD = max(_round_up(o_dim, 128), 128)

    # --- operand prep ---------------------------------------------------------
    in_dtype = jnp.bfloat16 if use_bf16 else x.dtype
    x_in = x.astype(in_dtype)
    w1_in = w1.astype(in_dtype)
    b1_2d = b1.reshape(1, h_dim).astype(jnp.float32)

    if o_dim == 1:
        kernel = _nnrg_kernel_reduce
        w2_in = w2.astype(jnp.float32).reshape(1, h_dim)          # row vector
        b2_in = jnp.broadcast_to(
            b2.astype(jnp.float32).reshape(1, 1), (1, OUT_PAD))
        w2_block = (1, h_dim)
    else:
        kernel = _nnrg_kernel_matmul
        w2_in = jnp.pad(w2.astype(jnp.float32), ((0, 0), (0, OUT_PAD - o_dim)))
        b2_in = jnp.pad(b2.astype(jnp.float32).reshape(1, o_dim),
                        ((0, 0), (0, OUT_PAD - o_dim)))
        w2_block = (h_dim, OUT_PAD)

    # --- specs: x / out walk the batch grid, weights stay resident ----------
    in_specs = [
        pl.BlockSpec((TILE_B, i_dim), lambda i: (i, 0)),   # x (pipelined)
        pl.BlockSpec((i_dim, h_dim), lambda i: (0, 0)),    # w1 (resident)
        pl.BlockSpec((1, h_dim), lambda i: (0, 0)),        # b1 (resident)
        pl.BlockSpec(w2_block, lambda i: (0, 0)),          # w2 (resident)
        pl.BlockSpec((1, OUT_PAD), lambda i: (0, 0)),      # b2 (resident)
    ]
    out_specs = pl.BlockSpec((TILE_B, OUT_PAD), lambda i: (i, 0))

    # Advisory cost estimate so XLA treats this custom call as cheap.
    itemsize = jnp.dtype(in_dtype).itemsize
    flops = 2 * B_pad * i_dim * h_dim + 2 * B_pad * h_dim * o_dim
    bytes_accessed = (
        B_pad * i_dim * itemsize                 # x
        + i_dim * h_dim * itemsize               # w1
        + h_dim * 4                              # b1
        + int(w2_in.size) * 4 + int(b2_in.size) * 4
        + B_pad * OUT_PAD * 4                    # output slab
    )
    cost = pl.CostEstimate(flops=flops, transcendentals=0,
                           bytes_accessed=int(bytes_accessed))

    out = pl.pallas_call(
        kernel,
        out_shape=jax.ShapeDtypeStruct((B_pad, OUT_PAD), jnp.float32),
        grid=(num_blocks,),
        in_specs=in_specs,
        out_specs=out_specs,
        compiler_params=pltpu.CompilerParams(
            dimension_semantics=("parallel",)),
        cost_estimate=cost,
    )(x_in, w1_in, b1_2d, w2_in, b2_in)

    return out[:B, :o_dim]


def _reference(x, w1, b1, w2, b2):
    h = jnp.maximum(x @ w1 + b1, 0.0)
    return h @ w2 + b2


if __name__ == "__main__":
    # Small shapes consistent with the module defaults.
    B, I_DIM, H_DIM, O_DIM = 8, 640, 16, 1

    key = jax.random.PRNGKey(0)
    kx, kw1, kb1, kw2, kb2 = jax.random.split(key, 5)

    x = jax.random.normal(kx, (B, I_DIM), dtype=jnp.float32)

    # Deterministic parameter init (PyTorch-style uniform bounds, synthetic).
    bound1 = 1.0 / (I_DIM ** 0.5)
    w1 = jax.random.uniform(kw1, (I_DIM, H_DIM), jnp.float32, -bound1, bound1)
    b1 = jax.random.uniform(kb1, (H_DIM,), jnp.float32, -bound1, bound1)

    bound2 = 1.0 / (H_DIM ** 0.5)
    w2 = jax.random.uniform(kw2, (H_DIM, O_DIM), jnp.float32, -bound2, bound2)
    b2 = jax.random.uniform(kb2, (O_DIM,), jnp.float32, -bound2, bound2)

    y_ref = _reference(x, w1, b1, w2, b2)

    # f32 path — matches the PyTorch module semantics.
    y = jax.block_until_ready(nnrg_forward(x, w1, b1, w2, b2))
    assert y.shape == (B, O_DIM)
    assert jnp.allclose(y, y_ref, atol=1e-4, rtol=1e-4), "f32 mismatch vs reference"

    # bf16-input path (f32 accumulation) — halves HBM traffic / MXU passes.
    y_bf = jax.block_until_ready(nnrg_forward(x, w1, b1, w2, b2, use_bf16=True))
    assert y_bf.shape == (B, O_DIM)
    assert jnp.allclose(y_bf, y_ref, atol=5e-2, rtol=5e-2), "bf16 mismatch vs reference"

    print("KERNEL_OK")
</pallas_src>

<mosaic_0001>
module attributes {stable_mosaic.version = 11 : i64} {
  func.func @_nnrg_kernel_reduce(%arg0: i32, %arg1: memref<8x640xf32, #tpu.memory_space<vmem>>, %arg2: memref<640x16xf32, #tpu.memory_space<vmem>>, %arg3: memref<1x16xf32, #tpu.memory_space<vmem>>, %arg4: memref<1x16xf32, #tpu.memory_space<vmem>>, %arg5: memref<1x128xf32, #tpu.memory_space<vmem>>, %arg6: memref<8x128xf32, #tpu.memory_space<vmem>>) attributes {dimension_semantics = [#tpu.dimension_semantics<parallel>], iteration_bounds = array<i64: 1>, scalar_prefetch = 0 : i64, scratch_operands = 0 : i64, tpu.core_type = #tpu.core_type<tc>, window_params = [{transform_indices = @transform_0, window_bounds = array<i64: 8, 640>}, {pipeline_mode = #tpu.pipeline_mode<synchronous>, transform_indices = @transform_1, window_bounds = array<i64: 640, 16>}, {pipeline_mode = #tpu.pipeline_mode<synchronous>, transform_indices = @transform_2, window_bounds = array<i64: 1, 16>}, {pipeline_mode = #tpu.pipeline_mode<synchronous>, transform_indices = @transform_3, window_bounds = array<i64: 1, 16>}, {pipeline_mode = #tpu.pipeline_mode<synchronous>, transform_indices = @transform_4, window_bounds = array<i64: 1, 128>}, {transform_indices = @transform_5, window_bounds = array<i64: 8, 128>}]} {
    %c0 = arith.constant 0 : index
    %c0_0 = arith.constant 0 : index
    %0 = vector.load %arg1[%c0, %c0_0] : memref<8x640xf32, #tpu.memory_space<vmem>>, vector<8x640xf32>
    %c0_1 = arith.constant 0 : index
    %c0_2 = arith.constant 0 : index
    %1 = vector.load %arg2[%c0_1, %c0_2] : memref<640x16xf32, #tpu.memory_space<vmem>>, vector<640x16xf32>
    %cst = arith.constant dense<0.000000e+00> : vector<8x16xf32>
    %2 = tpu.matmul %0, %1, %cst {dimension_numbers = #tpu.dot_dimension_numbers<[1], [0], [0], [1], [0, 0, 1, 1], [], []>} : vector<8x640xf32>, vector<640x16xf32>, vector<8x16xf32> -> vector<8x16xf32>
    %c0_3 = arith.constant 0 : index
    %c0_4 = arith.constant 0 : index
    %3 = vector.load %arg3[%c0_3, %c0_4] : memref<1x16xf32, #tpu.memory_space<vmem>>, vector<1x16xf32>
    %4 = vector.broadcast %3 : vector<1x16xf32> to vector<8x16xf32>
    %5 = arith.addf %2, %4 : vector<8x16xf32>
    %cst_5 = arith.constant 0.000000e+00 : f32
    %6 = vector.broadcast %cst_5 : f32 to vector<8x16xf32>
    %7 = arith.maximumf %5, %6 : vector<8x16xf32>
    %c0_6 = arith.constant 0 : index
    %c0_7 = arith.constant 0 : index
    %8 = vector.load %arg4[%c0_6, %c0_7] : memref<1x16xf32, #tpu.memory_space<vmem>>, vector<1x16xf32>
    %9 = vector.broadcast %8 : vector<1x16xf32> to vector<8x16xf32>
    %10 = arith.mulf %7, %9 : vector<8x16xf32>
    %cst_8 = arith.constant dense<0.000000e+00> : vector<8xf32>
    %11 = vector.multi_reduction <add>, %10, %cst_8 [1] : vector<8x16xf32> to vector<8xf32>
    %12 = vector.shape_cast %11 : vector<8xf32> to vector<8x1xf32>
    %13 = vector.shape_cast %12 : vector<8x1xf32> to vector<8x1xf32>
    %14 = vector.broadcast %13 : vector<8x1xf32> to vector<8x128xf32>
    %c0_9 = arith.constant 0 : index
    %c0_10 = arith.constant 0 : index
    %15 = vector.load %arg5[%c0_9, %c0_10] : memref<1x128xf32, #tpu.memory_space<vmem>>, vector<1x128xf32>
    %16 = vector.broadcast %15 : vector<1x128xf32> to vector<8x128xf32>
    %17 = arith.addf %14, %16 : vector<8x128xf32>
    %c0_11 = arith.constant 0 : index
    %c0_12 = arith.constant 0 : index
    %18 = vector.load %arg6[%c0_11, %c0_12] : memref<8x128xf32, #tpu.memory_space<vmem>>, vector<8x128xf32>
    tpu.vector_store %arg6[%c0_11, %c0_12], %17 {strides = array<i32>} : memref<8x128xf32, #tpu.memory_space<vmem>>, vector<8x128xf32>,
    return
  }
  func.func @transform_0(%arg0: i32) -> (i32, i32) {
    %c0_i32 = arith.constant 0 : i32
    %c0_i32_0 = arith.constant 0 : i32
    return %arg0, %c0_i32 : i32, i32
  }
  func.func @transform_1(%arg0: i32) -> (i32, i32) {
    %c0_i32 = arith.constant 0 : i32
    %c0_i32_0 = arith.constant 0 : i32
    %c0_i32_1 = arith.constant 0 : i32
    return %c0_i32, %c0_i32_0 : i32, i32
  }
  func.func @transform_2(%arg0: i32) -> (i32, i32) {
    %c0_i32 = arith.constant 0 : i32
    %c0_i32_0 = arith.constant 0 : i32
    %c0_i32_1 = arith.constant 0 : i32
    return %c0_i32, %c0_i32_0 : i32, i32
  }
  func.func @transform_3(%arg0: i32) -> (i32, i32) {
    %c0_i32 = arith.constant 0 : i32
    %c0_i32_0 = arith.constant 0 : i32
    %c0_i32_1 = arith.constant 0 : i32
    return %c0_i32, %c0_i32_0 : i32, i32
  }
  func.func @transform_4(%arg0: i32) -> (i32, i32) {
    %c0_i32 = arith.constant 0 : i32
    %c0_i32_0 = arith.constant 0 : i32
    %c0_i32_1 = arith.constant 0 : i32
    return %c0_i32, %c0_i32_0 : i32, i32
  }
  func.func @transform_5(%arg0: i32) -> (i32, i32) {
    %c0_i32 = arith.constant 0 : i32
    %c0_i32_0 = arith.constant 0 : i32
    return %arg0, %c0_i32 : i32, i32
  }
}

</mosaic_0001>

<bundles_post_ra>
// kernel: tpu_custom_call.1
= control target key start
LH: loop header
LB: loop body
LE: loop exit
PB: predicated region body
PF: predicated region fallthrough
CT: control target
= control target key end

     0   :  { %s570_s0 = inlined_call_operand.vmem [shape: f32[8,640], index: 0, kind: input, shape index: {}]   ;;  %s571_s1 = inlined_call_operand.vmem [shape: f32[640,16], index: 1, kind: input, shape index: {}]   ;;  %s572_s2 = inlined_call_operand.vmem [shape: f32[1,16], index: 2, kind: input, shape index: {}]   ;;  %s573_s3 = inlined_call_operand.vmem [shape: f32[1,16], index: 3, kind: input, shape index: {}]   ;;  %s574_s4 = inlined_call_operand.vmem [shape: f32[1,128], index: 4, kind: input, shape index: {}]   ;;  %s575_s5 = inlined_call_operand.hbm [shape: f32[8,128], index: 5, kind: output, shape index: {}]  }
   0x1   :  { %v41_v0 = vld [vmem:[%s571_s1 + $0x78] sm:$0xff]  ;;  %v40_v1 = vld [vmem:[%s571_s1 + $0x70] sm:$0xff]  ;;  %v39_v2 = vld [vmem:[%s571_s1 + $0x68] sm:$0xff] }
   0x2   :  { %110 = vmatpush.msra.mxu0 %v41_v0  ;;  %v73_v3 = vld [vmem:[%s571_s1 + $0x178] sm:$0xff]  ;;  %v38_v4 = vld [vmem:[%s571_s1 + $0x60] sm:$0xff]  ;;  %v72_v5 = vld [vmem:[%s571_s1 + $0x170] sm:$0xff] }
   0x3   :  { %150 = vmatpush.msra.mxu2 %v73_v3  ;;  %v89_v6 = vld [vmem:[%s571_s1 + $0x1f8] sm:$0xff]  ;;  %v71_v8 = vld [vmem:[%s571_s1 + $0x168] sm:$0xff]  ;;  %v88_v10 = vld [vmem:[%s571_s1 + $0x1f0] sm:$0xff] }
   0x4   :  { %111 = vmatpush.msra.mxu0 %v40_v1  ;;  %170 = vmatpush.msra.mxu3 %v89_v6  ;;  %v57_v7 = vld [vmem:[%s571_s1 + $0xf8] sm:$0xff]  ;;  %v56_v11 = vld [vmem:[%s571_s1 + $0xf0] sm:$0xff]  ;;  %v70_v12 = vld [vmem:[%s571_s1 + $0x160] sm:$0xff] }
   0x5   :  { %v37_v9 = vld [vmem:[%s571_s1 + $0x58] sm:$0xff]  ;;  %151 = vmatpush.msra.mxu2 %v72_v5  ;;  %130 = vmatpush.msra.mxu1 %v57_v7  ;;  %v87_v13 = vld [vmem:[%s571_s1 + $0x1e8] sm:$0xff]  ;;  %v36_v14 = vld [vmem:[%s571_s1 + $0x50] sm:$0xff] }
   0x6   :  { %112 = vmatpush.msra.mxu0 %v39_v2  ;;  %171 = vmatpush.msra.mxu3 %v88_v10  ;;  %v55_v15 = vld [vmem:[%s571_s1 + $0xe8] sm:$0xff]  ;;  %v86_v16 = vld [vmem:[%s571_s1 + $0x1e0] sm:$0xff]  ;;  %v69_v17 = vld [vmem:[%s571_s1 + $0x158] sm:$0xff] }
   0x7   :  { %152 = vmatpush.msra.mxu2 %v71_v8  ;;  %131 = vmatpush.msra.mxu1 %v56_v11  ;;  %v54_v18 = vld [vmem:[%s571_s1 + $0xe0] sm:$0xff]  ;;  %v35_v19 = vld [vmem:[%s571_s1 + $0x48] sm:$0xff]  ;;  %v85_v20 = vld [vmem:[%s571_s1 + $0x1d8] sm:$0xff] }
   0x8   :  { %113 = vmatpush.msra.mxu0 %v38_v4  ;;  %172 = vmatpush.msra.mxu3 %v87_v13  ;;  %v68_v21 = vld [vmem:[%s571_s1 + $0x150] sm:$0xff]  ;;  %v53_v22 = vld [vmem:[%s571_s1 + $0xd8] sm:$0xff]  ;;  %v34_v23 = vld [vmem:[%s571_s1 + $0x40] sm:$0xff] }
   0x9   :  { %153 = vmatpush.msra.mxu2 %v70_v12  ;;  %132 = vmatpush.msra.mxu1 %v55_v15  ;;  %v84_v24 = vld [vmem:[%s571_s1 + $0x1d0] sm:$0xff]  ;;  %v67_v25 = vld [vmem:[%s571_s1 + $0x148] sm:$0xff]  ;;  %v33_v27 = vld [vmem:[%s571_s1 + $0x38] sm:$0xff] }
   0xa   :  { %114 = vmatpush.msra.mxu0 %v37_v9  ;;  %173 = vmatpush.msra.mxu3 %v86_v16  ;;  %v52_v26 = vld [vmem:[%s571_s1 + $0xd0] sm:$0xff]  ;;  %v83_v28 = vld [vmem:[%s571_s1 + $0x1c8] sm:$0xff]  ;;  %v66_v29 = vld [vmem:[%s571_s1 + $0x140] sm:$0xff] }
   0xb   :  { %154 = vmatpush.msra.mxu2 %v69_v17  ;;  %133 = vmatpush.msra.mxu1 %v54_v18  ;;  %v51_v30 = vld [vmem:[%s571_s1 + $0xc8] sm:$0xff]  ;;  %v32_v31 = vld [vmem:[%s571_s1 + $0x30] sm:$0xff]  ;;  %v82_v32 = vld [vmem:[%s571_s1 + $0x1c0] sm:$0xff] }
   0xc   :  { %115 = vmatpush.msra.mxu0 %v36_v14  ;;  %174 = vmatpush.msra.mxu3 %v85_v20  ;;  %v65_v33 = vld [vmem:[%s571_s1 + $0x138] sm:$0xff]  ;;  %v50_v34 = vld [vmem:[%s571_s1 + $0xc0] sm:$0xff]  ;;  %v31_v35 = vld [vmem:[%s571_s1 + $0x28] sm:$0xff] }
   0xd   :  { %155 = vmatpush.msra.mxu2 %v68_v21  ;;  %134 = vmatpush.msra.mxu1 %v53_v22  ;;  %v81_v36 = vld [vmem:[%s571_s1 + $0x1b8] sm:$0xff]  ;;  %v64_v37 = vld [vmem:[%s571_s1 + $0x130] sm:$0xff]  ;;  %v30_v39 = vld [vmem:[%s571_s1 + $0x20] sm:$0xff] }
   0xe   :  { %116 = vmatpush.msra.mxu0 %v35_v19  ;;  %175 = vmatpush.msra.mxu3 %v84_v24  ;;  %v49_v38 = vld [vmem:[%s571_s1 + $0xb8] sm:$0xff]  ;;  %v80_v40 = vld [vmem:[%s571_s1 + $0x1b0] sm:$0xff]  ;;  %v63_v41 = vld [vmem:[%s571_s1 + $0x128] sm:$0xff] }
   0xf   :  { %156 = vmatpush.msra.mxu2 %v67_v25  ;;  %135 = vmatpush.msra.mxu1 %v52_v26  ;;  %v48_v42 = vld [vmem:[%s571_s1 + $0xb0] sm:$0xff]  ;;  %v29_v43 = vld [vmem:[%s571_s1 + $0x18] sm:$0xff]  ;;  %v79_v44 = vld [vmem:[%s571_s1 + $0x1a8] sm:$0xff] }
  0x10   :  { %117 = vmatpush.msra.mxu0 %v34_v23  ;;  %176 = vmatpush.msra.mxu3 %v83_v28  ;;  %v62_v45 = vld [vmem:[%s571_s1 + $0x120] sm:$0xff]  ;;  %v47_v46 = vld [vmem:[%s571_s1 + $0xa8] sm:$0xff]  ;;  %v28_v47 = vld [vmem:[%s571_s1 + $0x10] sm:$0xff] }
  0x11   :  { %157 = vmatpush.msra.mxu2 %v66_v29  ;;  %136 = vmatpush.msra.mxu1 %v51_v30  ;;  %v78_v48 = vld [vmem:[%s571_s1 + $0x1a0] sm:$0xff]  ;;  %v61_v49 = vld [vmem:[%s571_s1 + $0x118] sm:$0xff]  ;;  %v27_v51 = vld [vmem:[%s571_s1 + $0x8] sm:$0xff] }
  0x12   :  { %118 = vmatpush.msra.mxu0 %v33_v27  ;;  %177 = vmatpush.msra.mxu3 %v82_v32  ;;  %v46_v50 = vld [vmem:[%s571_s1 + $0xa0] sm:$0xff]  ;;  %v77_v53 = vld [vmem:[%s571_s1 + $0x198] sm:$0xff]  ;;  %v60_v54 = vld [vmem:[%s571_s1 + $0x110] sm:$0xff] }
  0x13   :  { %158 = vmatpush.msra.mxu2 %v65_v33  ;;  %137 = vmatpush.msra.mxu1 %v50_v34  ;;  %v26_v52 = vld [vmem:[%s571_s1] sm:$0xff]  ;;  %v45_v55 = vld [vmem:[%s571_s1 + $0x98] sm:$0xff]  ;;  %v76_v56 = vld [vmem:[%s571_s1 + $0x190] sm:$0xff] }
  0x14   :  { %119 = vmatpush.msra.mxu0 %v32_v31  ;;  %178 = vmatpush.msra.mxu3 %v81_v36  ;;  %v105_v57 = vld [vmem:[%s571_s1 + $0x278] sm:$0xff]  ;;  %v59_v58 = vld [vmem:[%s571_s1 + $0x108] sm:$0xff] }
  0x15   :  { %159 = vmatpush.msra.mxu2 %v64_v37  ;;  %138 = vmatpush.msra.mxu1 %v49_v38 }
  0x16   :  { %120 = vmatpush.msra.mxu0 %v31_v35  ;;  %179 = vmatpush.msra.mxu3 %v80_v40 }
  0x17   :  { %160 = vmatpush.msra.mxu2 %v63_v41  ;;  %139 = vmatpush.msra.mxu1 %v48_v42 }
  0x18   :  { %121 = vmatpush.msra.mxu0 %v30_v39  ;;  %180 = vmatpush.msra.mxu3 %v79_v44 }
  0x19   :  { %161 = vmatpush.msra.mxu2 %v62_v45  ;;  %140 = vmatpush.msra.mxu1 %v47_v46 }
  0x1a   :  { %122 = vmatpush.msra.mxu0 %v29_v43  ;;  %181 = vmatpush.msra.mxu3 %v78_v48 }
  0x1b   :  { %162 = vmatpush.msra.mxu2 %v61_v49  ;;  %141 = vmatpush.msra.mxu1 %v46_v50 }
  0x1c   :  { %123 = vmatpush.msra.mxu0 %v28_v47  ;;  %182 = vmatpush.msra.mxu3 %v77_v53 }
  0x1e   :  { %124 = vmatpush.msra.mxu0 %v27_v51 }
  0x1f   :  { %10 = vsyncpa [#allocation3], 0  ;;  %163 = vmatpush.msra.mxu2 %v60_v54  ;;  %142 = vmatpush.msra.mxu1 %v45_v55  ;;  %v44_v59 = vld [vmem:[%s571_s1 + $0x90] sm:$0xff]  ;;  %v75_v60 = vld [vmem:[%s571_s1 + $0x188] sm:$0xff]  ;;  %vm216_vm0 = vcmask 130048   ;;  %s272_s16 = smov [#allocation2]  }
  0x20   :  { %125 = vmatpush.msra.mxu0 %v26_v52  ;;  %v104_v61 = vld [vmem:[%s571_s1 + $0x270] sm:$0xff]  ;;  %183 = vmatpush.msra.mxu3 %v76_v56  ;;  %v58_v62 = vld [vmem:[%s571_s1 + $0x100] sm:$0xff]  ;;  %v43_v0 = vld [vmem:[%s571_s1 + $0x88] sm:$0xff]  ;;  %s231_s17 = sshll.u32 %s272_s16, 4  ;;  %s233_s20 = sshll.u32 %s575_s5, 4  ;;  %s232_s17 = int_to_ptr.vmem [resolvable:$true] %s231_s17  ;;  %s234_s20 = int_to_ptr.hbm [resolvable:$true] %s233_s20 }
  0x21   :  { %164 = vmatpush.msra.mxu2 %v59_v58  ;;  %v23_v63 = vld [vmem:[%s570_s0 + $0x10] sm:$0xff]  ;;  %v103_v1 = vld [vmem:[%s571_s1 + $0x268] sm:$0xff]  ;;  %143 = vmatpush.msra.mxu1 %v44_v59  ;;  %v74_v2 = vld [vmem:[%s571_s1 + $0x180] sm:$0xff] }
  0x22   :  { %190 = vmatpush.msrb.mxu0 %v105_v57  ;;  %184 = vmatpush.msra.mxu3 %v75_v60  ;;  %v21_v3 = vld [vmem:[%s570_s0] sm:$0xff]  ;;  %v24_v4 = vld [vmem:[%s570_s0 + $0x18] sm:$0xff]  ;;  %v22_v7 = vld [vmem:[%s570_s0 + $0x8] sm:$0xff] }
  0x23   :  { %165 = vmatpush.msra.mxu2 %v58_v62  ;;  %v102_v5 = vld [vmem:[%s571_s1 + $0x260] sm:$0xff]  ;;  %144 = vmatpush.msra.mxu1 %v43_v0  ;;  %v101_v8 = vld [vmem:[%s571_s1 + $0x258] sm:$0xff]  ;;  %v100_v9 = vld [vmem:[%s571_s1 + $0x250] sm:$0xff] }
  0x24   :  { %191 = vmatpush.msrb.mxu0 %v104_v61  ;;  %166 = vmatmul.f32.vlgmr.msra.gmra.mxu2 %v23_v63  ;;  %v42_v6 = vld [vmem:[%s571_s1 + $0x80] sm:$0xff]  ;;  %v99_v10 = vld [vmem:[%s571_s1 + $0x248] sm:$0xff]  ;;  %v97_v12 = vld [vmem:[%s571_s1 + $0x238] sm:$0xff] }
  0x25   :  { %185 = vmatpush.msra.mxu3 %v74_v2  ;;  %126 = vmatmul.f32.vlgmr.msra.gmra.mxu0 %v21_v3  ;;  %v98_v11 = vld [vmem:[%s571_s1 + $0x240] sm:$0xff]  ;;  %v96_v13 = vld [vmem:[%s571_s1 + $0x230] sm:$0xff]  ;;  %v95_v14 = vld [vmem:[%s571_s1 + $0x228] sm:$0xff] }
  0x26   :  { %192 = vmatpush.msrb.mxu0 %v103_v1  ;;  %186 = vmatmul.f32.vlgmr.msra.gmra.mxu3 %v24_v4  ;;  %v94_v15 = vld [vmem:[%s571_s1 + $0x220] sm:$0xff]  ;;  %v93_v16 = vld [vmem:[%s571_s1 + $0x218] sm:$0xff]  ;;  %v92_v17 = vld [vmem:[%s571_s1 + $0x210] sm:$0xff] }
  0x27   :  { %145 = vmatpush.msra.mxu1 %v42_v6  ;;  %v91_v18 = vld [vmem:[%s571_s1 + $0x208] sm:$0xff]  ;;  %v90_v19 = vld [vmem:[%s571_s1 + $0x200] sm:$0xff] }
  0x28   :  { %193 = vmatpush.msrb.mxu0 %v102_v5  ;;  %146 = vmatmul.f32.vlgmr.msra.gmra.mxu1 %v22_v7  ;;  %v25_v20 = vld [vmem:[%s570_s0 + $0x20] sm:$0xff] }
  0x29   :  { %v243_v21 = vld [vmem:[%s572_s2] ss:$0 sm:$0xff] }
  0x2a   :  { %194 = vmatpush.msrb.mxu0 %v101_v8  ;;  %v244_v32 = vld [vmem:[%s573_s3] ss:$0 sm:$0xff] }
  0x2b   :  { %v245_v36 = vld [vmem:[%s574_s4] ss:$0 sm:$0xff] }
  0x2c   :  { %195 = vmatpush.msrb.mxu0 %v100_v9 }
  0x2e   :  { %196 = vmatpush.msrb.mxu0 %v99_v10 }
  0x30   :  { %197 = vmatpush.msrb.mxu0 %v98_v11 }
  0x32   :  { %198 = vmatpush.msrb.mxu0 %v97_v12 }
  0x34   :  { %199 = vmatpush.msrb.mxu0 %v96_v13 }
  0x36   :  { %200 = vmatpush.msrb.mxu0 %v95_v14 }
  0x38   :  { %201 = vmatpush.msrb.mxu0 %v94_v15 }
  0x3a   :  { %202 = vmatpush.msrb.mxu0 %v93_v16 }
  0x3c   :  { %203 = vmatpush.msrb.mxu0 %v92_v17 }
  0x3e   :  { %204 = vmatpush.msrb.mxu0 %v91_v18 }
  0x40   :  { %205 = vmatpush.msrb.mxu0 %v90_v19 }
  0x41   :  { %206 = vmatmul.f32.vlgmr.msrb.gmra.mxu0 %v25_v20 }
  0xa2   :  { %v127_v22 = vpop.f32.mrf.mxu0 }
  0xa3   :  { %v128_v23 = vadd.f32 %v243_v21, %v127_v22 }
  0xa5   :  { %v147_v24 = vpop.f32.mrf.mxu1 }
  0xa6   :  { %v148_v25 = vadd.f32 %v147_v24, %v128_v23 }
  0xa7   :  { %v167_v26 = vpop.f32.mrf.mxu2 }
  0xa8   :  { %v168_v27 = vadd.f32 %v167_v26, %v148_v25 }
  0xa9   :  { %v187_v28 = vpop.f32.mrf.mxu3 }
  0xaa   :  { %v188_v29 = vadd.f32 %v187_v28, %v168_v27 }
  0xbe   :  { %v207_v30 = vpop.f32.mrf.mxu0 }
  0xbf   :  { %v208_v31 = vadd.f32 %v207_v30, %v188_v29 }
  0xc1   :  { %v210_v33 = vmax.f32 %v208_v31, 0.0 }
  0xc3   :  { %v215_v34 = vmul.f32 %v244_v32, %v210_v33 }
  0xc5   :  { %v217_v35 = vsel %vm216_vm0, %v215_v34, 0.0 }
  0xc6   :  { %218 = vadd.xlane.f32.xlu0 %v217_v35 }
 0x139   :  { %v219_v37 = vpop.xlane.xlu0 %218 }
 0x13a   :  { %v224_v38 = vadd.f32 %v245_v36, %v219_v37 }
 0x13c   :  { %225 = vst [vmem:[#allocation2] sm:$0xff] %v224_v38 }
 0x13d   :  { %236 = dma.vmem_to_hbm [thread:$0]  %s232_s17, 128, %s234_s20, [#allocation3]  }
 0x13e   :  { %270 = dma.done.wait [#allocation3], 128  }
 0x13f   :  { %271 = vsyncadd [#allocation3], 4294967168 }
 0x140   :  { %241 = vsyncpa [#allocation3], 1 }

</bundles_post_ra>
